<compile_context>
chip_gen: v7x
topology: tpu7x:2x2x1
jax: 0.10.0
libtpu: 0.0.40
codegen_flags: <defaults>
</compile_context>

<pallas_src>
import functools

import jax
import jax.numpy as jnp
from jax.experimental import pallas as pl
from jax.experimental.pallas import tpu as pltpu


def _round_up(x, m):
    return (x + m - 1) // m * m


def _cdiv(a, b):
    return -(-a // b)


def _fc_tiling(V, tile_target=4096):
    """Vocab tiling: Vp = n_chunks * n_tiles * tile_v (128-lane multiples).

    n_chunks=2 keeps the leading 'parallel' grid axis evenly splittable across
    v7x's two TensorCores; padding waste is bounded by 128*n_chunks*n_tiles.
    """
    vp0 = _round_up(V, 128)
    n_chunks = 2 if vp0 >= 256 else 1
    per_chunk = _round_up(_cdiv(vp0, n_chunks), 128)
    n_tiles = max(1, _cdiv(per_chunk, tile_target))
    tile_v = _round_up(_cdiv(per_chunk, n_tiles), 128)
    return n_chunks * n_tiles * tile_v, tile_v, n_chunks, n_tiles


_SMALL_WEIGHTS = ("w_attn_h", "w_attn_e", "b_attn", "v_attn",
                  "w_ih_e", "w_ih_w", "b_ih", "w_hh", "b_hh")


# ---------------------------------------------------------------------------
# One-time preprocessing (hoisted out of the per-token decode step).
# ---------------------------------------------------------------------------
def prepare_decoder_params(params, fc_compute_dtype=jnp.bfloat16,
                           fc_tile_target=4096):
    """Fuse fc_out's weight along the cat((output, weighted, embedded)) boundary,
    pad the vocab axis to the tile grid and cast the (HBM-dominant) weight stream
    to the compute dtype.  Done ONCE, not per decode step."""
    V = params["b_fc"].shape[1]
    Vp, _, _, _ = _fc_tiling(V, fc_tile_target)
    f32 = jnp.float32
    w_fc = jnp.concatenate([params["wfc_o"], params["wfc_w"], params["wfc_e"]],
                           axis=0).astype(f32)                         # [K, V]
    w_fc = jnp.pad(w_fc, ((0, 0), (0, Vp - V))).astype(fc_compute_dtype)
    b_fc = jnp.pad(params["b_fc"].astype(f32), ((0, 0), (0, Vp - V)))  # [1, Vp]
    prep = {k: params[k].astype(f32) for k in ("embedding",) + _SMALL_WEIGHTS}
    prep["w_fc"] = w_fc
    prep["b_fc"] = b_fc
    return prep


def prepare_encoder_state(encoder_outputs, mask):
    """Once per source sequence (loop-invariant across decode steps):
    batch-major layout + padding to TPU sublane multiples."""
    S, B, F = encoder_outputs.shape
    Bp = max(_round_up(B, 8), 8)
    Sp = _round_up(S, 8)
    enc = jnp.transpose(encoder_outputs, (1, 0, 2)).astype(jnp.float32)   # [B,S,F]
    enc_p = jnp.zeros((Bp, Sp, F), jnp.float32).at[:B, :S].set(enc)
    mask_p = jnp.zeros((Bp, Sp), jnp.float32).at[:B, :S].set(
        mask.astype(jnp.float32))
    return enc_p, mask_p


# ---------------------------------------------------------------------------
# Fused decoder-step kernel.
#   grid = (vocab chunks ["parallel"], vocab tiles per chunk ["arbitrary"])
#   tile j==0 of each chunk: attention + weighted context + 1-step GRU
#   every tile: fused fc_out matmul on one lane-dense vocab slab
# ---------------------------------------------------------------------------
def _decoder_kernel(emb_ref, hid_ref, enc_ref, mask_ref,
                    wah_ref, wae_ref, battn_ref, vattn_ref,
                    wihe_ref, wihw_ref, bih_ref, whh_ref, bhh_ref,
                    wfc_ref, bfc_ref,
                    pred_ref, hnew_ref, attn_ref,
                    hnew_s, wgt_s):
    Hd = hid_ref.shape[1]
    F = wgt_s.shape[1]
    E = emb_ref.shape[1]

    # ---- once per vocab chunk: attention + weighted context + GRU ---------
    @pl.when(pl.program_id(1) == 0)
    def _():
        emb = emb_ref[...]                    # [Bp, E]
        h = hid_ref[...]                      # [Bp, Hd]
        enc = enc_ref[...]                    # [Bp, Sp, F]
        mask = mask_ref[...]                  # [Bp, Sp] float 0/1
        Bp, Sp, Fe = enc.shape

        # Bahdanau attention (exact softmax -- no approximate reciprocal).
        e_h = (jnp.dot(h, wah_ref[...], preferred_element_type=jnp.float32)
               + battn_ref[...])                                          # [Bp, Hd]
        e_e = jnp.dot(enc.reshape(Bp * Sp, Fe), wae_ref[...],
                      preferred_element_type=jnp.float32).reshape(Bp, Sp, Hd)
        energy = jnp.tanh(e_e + e_h[:, None, :])                          # [Bp,Sp,Hd]
        scores = jnp.sum(energy * vattn_ref[...], axis=-1)                # [Bp, Sp]
        scores = jnp.where(mask > 0.5, scores, jnp.float32(-1e10))
        m = jnp.max(scores, axis=-1, keepdims=True)
        es = jnp.exp(scores - m)
        a = es / jnp.sum(es, axis=-1, keepdims=True)                      # [Bp, Sp]
        weighted = jnp.sum(a[:, :, None] * enc, axis=1)                   # [Bp, F]

        # One GRU step (PyTorch gate order r, z, n).
        gi = (jnp.dot(emb, wihe_ref[...], preferred_element_type=jnp.float32)
              + jnp.dot(weighted, wihw_ref[...], preferred_element_type=jnp.float32)
              + bih_ref[...])                                             # [Bp, 3Hd]
        gh = (jnp.dot(h, whh_ref[...], preferred_element_type=jnp.float32)
              + bhh_ref[...])                                             # [Bp, 3Hd]
        r = jax.nn.sigmoid(gi[:, 0:Hd] + gh[:, 0:Hd])
        z = jax.nn.sigmoid(gi[:, Hd:2 * Hd] + gh[:, Hd:2 * Hd])
        n = jnp.tanh(gi[:, 2 * Hd:3 * Hd] + r * gh[:, 2 * Hd:3 * Hd])
        h_new = (1.0 - z) * n + z * h                                     # [Bp, Hd]

        # Persist across the vocab tiles of this chunk + emit small outputs.
        hnew_s[...] = h_new
        wgt_s[...] = weighted
        hnew_ref[0] = h_new
        attn_ref[0] = a

    # ---- every tile: fused fc_out on this vocab slab -----------------------
    wdt = wfc_ref.dtype
    h_new = hnew_s[...].astype(wdt)
    weighted = wgt_s[...].astype(wdt)
    emb = emb_ref[...].astype(wdt)
    logits = (jnp.dot(h_new, wfc_ref[0:Hd, :],
                      preferred_element_type=jnp.float32)
              + jnp.dot(weighted, wfc_ref[Hd:Hd + F, :],
                        preferred_element_type=jnp.float32)
              + jnp.dot(emb, wfc_ref[Hd + F:Hd + F + E, :],
                        preferred_element_type=jnp.float32)
              + bfc_ref[...])
    pred_ref[...] = logits


# ---------------------------------------------------------------------------
# Per-token decode step.
# ---------------------------------------------------------------------------
@functools.partial(jax.jit, static_argnames=("V", "S", "fc_tile_target"))
def decoder_step(input_ids, hidden, enc_p, mask_p, prep, *, V, S,
                 fc_tile_target=4096):
    """input_ids [B] int32, hidden [B,Hd]; enc_p/mask_p from prepare_encoder_state,
    prep from prepare_decoder_params.  Returns (prediction [B,V], hidden [B,Hd],
    attention [B,S])."""
    B = input_ids.shape[0]
    Bp, Sp, F = enc_p.shape
    Hd = hidden.shape[1]
    E = prep["embedding"].shape[1]
    K = Hd + F + E

    Vp, tile_v, n_chunks, n_tiles = _fc_tiling(V, fc_tile_target)
    assert prep["w_fc"].shape == (K, Vp), "prep does not match V / fc_tile_target"

    # Per-step XLA glue (tiny): embedding gather + batch padding.
    # TODO(synk): nn.Dropout on the embedding treated as eval-mode identity.
    emb = prep["embedding"][input_ids]                                    # [B, E]
    emb_p = jnp.zeros((Bp, E), jnp.float32).at[:B].set(emb)
    hid_p = jnp.zeros((Bp, Hd), jnp.float32).at[:B].set(
        hidden.astype(jnp.float32))

    itemsize = jnp.dtype(prep["w_fc"].dtype).itemsize
    small_bytes = 4 * int(emb_p.size + hid_p.size + enc_p.size + mask_p.size
                          + sum(int(prep[k].size) for k in _SMALL_WEIGHTS))
    stream_bytes = K * tile_v * itemsize + 4 * tile_v + 4 * Bp * tile_v
    # Resident small operands (x2 for buffering) + double/triple-buffered
    # streamed tiles + slack; capped at v7x's 64 MiB per-TC VMEM.
    vmem_limit = int(min(64 << 20,
                         max(16 << 20, 2 * small_bytes + 3 * stream_bytes
                             + (2 << 20))))

    resident2 = lambda c, j: (0, 0)
    resident3 = lambda c, j: (0, 0, 0)
    vtile = lambda c, j: (0, c * n_tiles + j)

    flops = int(n_chunks * 2 * Bp * (Hd * Hd + Sp * F * Hd
                                     + (E + F + Hd) * 3 * Hd + 2 * Sp * F)
                + 2 * Bp * K * Vp)
    transc = int(n_chunks * Bp * (Sp * Hd + Sp + 3 * Hd))
    bytes_acc = int(K * Vp * itemsize + 4 * (Vp + Bp * Vp) + small_bytes
                    + 4 * n_chunks * Bp * (Hd + Sp))

    pred_pad, hnew_all, a_all = pl.pallas_call(
        _decoder_kernel,
        out_shape=(jax.ShapeDtypeStruct((Bp, Vp), jnp.float32),
                   jax.ShapeDtypeStruct((n_chunks, Bp, Hd), jnp.float32),
                   jax.ShapeDtypeStruct((n_chunks, Bp, Sp), jnp.float32)),
        grid_spec=pltpu.PrefetchScalarGridSpec(
            num_scalar_prefetch=0,
            grid=(n_chunks, n_tiles),
            in_specs=[
                pl.BlockSpec((Bp, E), resident2),          # embedded token
                pl.BlockSpec((Bp, Hd), resident2),         # previous hidden
                pl.BlockSpec((Bp, Sp, F), resident3),      # encoder outputs
                pl.BlockSpec((Bp, Sp), resident2),         # mask
                pl.BlockSpec((Hd, Hd), resident2),         # attn W (hidden part)
                pl.BlockSpec((F, Hd), resident2),          # attn W (encoder part)
                pl.BlockSpec((1, Hd), resident2),          # attn bias
                pl.BlockSpec((1, Hd), resident2),          # attn v
                pl.BlockSpec((E, 3 * Hd), resident2),      # GRU W_ih (embedded)
                pl.BlockSpec((F, 3 * Hd), resident2),      # GRU W_ih (weighted)
                pl.BlockSpec((1, 3 * Hd), resident2),      # GRU b_ih
                pl.BlockSpec((Hd, 3 * Hd), resident2),     # GRU W_hh
                pl.BlockSpec((1, 3 * Hd), resident2),      # GRU b_hh
                pl.BlockSpec((K, tile_v), vtile),          # fused fc_out weight tile
                pl.BlockSpec((1, tile_v), vtile),          # fc_out bias tile
            ],
            out_specs=(
                pl.BlockSpec((Bp, tile_v), vtile),                    # logits tile
                pl.BlockSpec((1, Bp, Hd), lambda c, j: (c, 0, 0)),    # new hidden
                pl.BlockSpec((1, Bp, Sp), lambda c, j: (c, 0, 0)),    # attention
            ),
            scratch_shapes=[pltpu.VMEM((Bp, Hd), jnp.float32),        # h_new
                            pltpu.VMEM((Bp, F), jnp.float32)],        # weighted ctx
        ),
        compiler_params=pltpu.CompilerParams(
            dimension_semantics=("parallel", "arbitrary"),
            vmem_limit_bytes=vmem_limit),
        cost_estimate=pl.CostEstimate(flops=flops, transcendentals=transc,
                                      bytes_accessed=bytes_acc),
    )(emb_p, hid_p, enc_p, mask_p,
      prep["w_attn_h"], prep["w_attn_e"], prep["b_attn"], prep["v_attn"],
      prep["w_ih_e"], prep["w_ih_w"], prep["b_ih"], prep["w_hh"], prep["b_hh"],
      prep["w_fc"], prep["b_fc"])

    return pred_pad[:B, :V], hnew_all[0, :B], a_all[0, :B, :S]


# ---------------------------------------------------------------------------
# Pure-JAX reference mirroring the PyTorch forward semantics.
# ---------------------------------------------------------------------------
def decoder_reference(input_ids, hidden, encoder_outputs, mask, params):
    Hd = hidden.shape[1]
    emb = params["embedding"][input_ids]
    enc = jnp.transpose(encoder_outputs, (1, 0, 2))                 # [B,S,F]
    e_h = hidden @ params["w_attn_h"]
    e_e = jnp.einsum("bsf,fh->bsh", enc, params["w_attn_e"])
    energy = jnp.tanh(e_e + e_h[:, None, :] + params["b_attn"])
    scores = jnp.sum(energy * params["v_attn"], axis=-1)
    scores = jnp.where(mask.astype(jnp.float32) > 0.5, scores, -1e10)
    a = jax.nn.softmax(scores, axis=-1)
    weighted = jnp.einsum("bs,bsf->bf", a, enc)
    gi = emb @ params["w_ih_e"] + weighted @ params["w_ih_w"] + params["b_ih"]
    gh = hidden @ params["w_hh"] + params["b_hh"]
    r = jax.nn.sigmoid(gi[:, :Hd] + gh[:, :Hd])
    z = jax.nn.sigmoid(gi[:, Hd:2 * Hd] + gh[:, Hd:2 * Hd])
    n = jnp.tanh(gi[:, 2 * Hd:] + r * gh[:, 2 * Hd:])
    h_new = (1.0 - z) * n + z * hidden
    pred = (h_new @ params["wfc_o"] + weighted @ params["wfc_w"]
            + emb @ params["wfc_e"] + params["b_fc"])
    return pred, h_new, a


if __name__ == "__main__":
    # Shapes consistent with the module: batch=2, src_len=8, emb_dim=32,
    # enc_hid_dim=32 (bidirectional -> 64), dec_hid_dim=32, vocab=64.
    B, S = 2, 8
    E, He, Hd, V = 32, 32, 32, 64
    F = 2 * He

    key = jax.random.PRNGKey(0)
    ks = jax.random.split(key, 20)
    sc = 0.1
    params = {
        "embedding": jax.random.normal(ks[0], (V, E), jnp.float32) * sc,
        # attention: Linear(2*He + Hd -> Hd), stored transposed & split along
        # the cat((hidden, encoder_outputs)) boundary; v = Linear(Hd,1,bias=False).
        "w_attn_h": jax.random.normal(ks[1], (Hd, Hd), jnp.float32) * sc,
        "w_attn_e": jax.random.normal(ks[2], (F, Hd), jnp.float32) * sc,
        "b_attn":   jax.random.normal(ks[3], (1, Hd), jnp.float32) * sc,
        "v_attn":   jax.random.normal(ks[4], (1, Hd), jnp.float32) * sc,
        # GRU(2*He + E -> Hd): weight_ih split along cat((embedded, weighted)).
        "w_ih_e":   jax.random.normal(ks[5], (E, 3 * Hd), jnp.float32) * sc,
        "w_ih_w":   jax.random.normal(ks[6], (F, 3 * Hd), jnp.float32) * sc,
        "b_ih":     jax.random.normal(ks[7], (1, 3 * Hd), jnp.float32) * sc,
        "w_hh":     jax.random.normal(ks[8], (Hd, 3 * Hd), jnp.float32) * sc,
        "b_hh":     jax.random.normal(ks[9], (1, 3 * Hd), jnp.float32) * sc,
        # fc_out(2*He + Hd + E -> V) split along cat((output, weighted, embedded)).
        "wfc_o":    jax.random.normal(ks[10], (Hd, V), jnp.float32) * sc,
        "wfc_w":    jax.random.normal(ks[11], (F, V), jnp.float32) * sc,
        "wfc_e":    jax.random.normal(ks[12], (E, V), jnp.float32) * sc,
        "b_fc":     jax.random.normal(ks[13], (1, V), jnp.float32) * sc,
    }

    input_ids = jax.random.randint(ks[14], (B,), 0, V, dtype=jnp.int32)
    hidden = jax.random.normal(ks[15], (B, Hd), jnp.float32)
    encoder_outputs = jax.random.normal(ks[16], (S, B, F), jnp.float32)
    lengths = jnp.array([S, 5], dtype=jnp.int32)
    mask = (jnp.arange(S)[None, :] < lengths[:, None]).astype(jnp.int32)  # [B, S]

    # Pure-JAX reference.
    pr, hr, ar = decoder_reference(input_ids, hidden, encoder_outputs, mask, params)

    # One-time prep (hoisted out of the per-token decode loop).
    enc_p, mask_p = prepare_encoder_state(encoder_outputs, mask)

    # Default path: bf16 fc_out weight stream (projection is HBM-bound;
    # accumulation stays f32 via preferred_element_type on every generation).
    prep_bf16 = prepare_decoder_params(params)
    pred, h_new, a = jax.block_until_ready(
        decoder_step(input_ids, hidden, enc_p, mask_p, prep_bf16, V=V, S=S))

    # f32 weight-stream path as well (tighter numerics, same kernel).
    prep_f32 = prepare_decoder_params(params, fc_compute_dtype=jnp.float32)
    pred32, h32, a32 = jax.block_until_ready(
        decoder_step(input_ids, hidden, enc_p, mask_p, prep_f32, V=V, S=S))

    assert pred.shape == (B, V) and h_new.shape == (B, Hd) and a.shape == (B, S)

    # Softmax is exact (no approximate reciprocal): rows sum to 1.
    assert jnp.allclose(jnp.sum(a, axis=-1), 1.0, atol=1e-5)
    assert jnp.allclose(jnp.sum(a32, axis=-1), 1.0, atol=1e-5)

    # Tolerances: attention weights are f32 end-to-end and held tight; pred /
    # h_new tolerances additionally cover reduced-precision MXU passes that XLA
    # may use for the f32 reference matmuls on TPU and the bf16 weight stream.
    assert jnp.allclose(a, ar, atol=5e-3, rtol=5e-3)
    assert jnp.allclose(a32, ar, atol=5e-3, rtol=5e-3)
    assert jnp.allclose(h_new, hr, atol=2e-2, rtol=2e-2)
    assert jnp.allclose(h32, hr, atol=2e-2, rtol=2e-2)
    assert jnp.allclose(pred32, pr, atol=2e-2, rtol=2e-2)
    assert jnp.allclose(pred, pr, atol=3e-2, rtol=3e-2)

    print("KERNEL_OK")
</pallas_src>

<mosaic_0001>
module attributes {stable_mosaic.version = 11 : i64} {
  func.func @_decoder_kernel(%arg0: i32, %arg1: i32, %arg2: memref<8x32xf32, #tpu.memory_space<vmem>>, %arg3: memref<8x32xf32, #tpu.memory_space<vmem>>, %arg4: memref<8x8x64xf32, #tpu.memory_space<vmem>>, %arg5: memref<8x8xf32, #tpu.memory_space<vmem>>, %arg6: memref<32x32xf32, #tpu.memory_space<vmem>>, %arg7: memref<64x32xf32, #tpu.memory_space<vmem>>, %arg8: memref<1x32xf32, #tpu.memory_space<vmem>>, %arg9: memref<1x32xf32, #tpu.memory_space<vmem>>, %arg10: memref<32x96xf32, #tpu.memory_space<vmem>>, %arg11: memref<64x96xf32, #tpu.memory_space<vmem>>, %arg12: memref<1x96xf32, #tpu.memory_space<vmem>>, %arg13: memref<32x96xf32, #tpu.memory_space<vmem>>, %arg14: memref<1x96xf32, #tpu.memory_space<vmem>>, %arg15: memref<128x128xbf16, #tpu.memory_space<vmem>>, %arg16: memref<1x128xf32, #tpu.memory_space<vmem>>, %arg17: memref<8x128xf32, #tpu.memory_space<vmem>>, %arg18: memref<1x8x32xf32, #tpu.memory_space<vmem>>, %arg19: memref<1x8x8xf32, #tpu.memory_space<vmem>>, %arg20: memref<8x32xf32, #tpu.memory_space<vmem>>, %arg21: memref<8x64xf32, #tpu.memory_space<vmem>>) attributes {dimension_semantics = [#tpu.dimension_semantics<parallel>, #tpu.dimension_semantics<arbitrary>], iteration_bounds = array<i64: 1, 1>, scalar_prefetch = 0 : i64, scratch_operands = 2 : i64, tpu.core_type = #tpu.core_type<tc>, window_params = [{pipeline_mode = #tpu.pipeline_mode<synchronous>, transform_indices = @transform_0, window_bounds = array<i64: 8, 32>}, {pipeline_mode = #tpu.pipeline_mode<synchronous>, transform_indices = @transform_1, window_bounds = array<i64: 8, 32>}, {pipeline_mode = #tpu.pipeline_mode<synchronous>, transform_indices = @transform_2, window_bounds = array<i64: 8, 8, 64>}, {pipeline_mode = #tpu.pipeline_mode<synchronous>, transform_indices = @transform_3, window_bounds = array<i64: 8, 8>}, {pipeline_mode = #tpu.pipeline_mode<synchronous>, transform_indices = @transform_4, window_bounds = array<i64: 32, 32>}, {pipeline_mode = #tpu.pipeline_mode<synchronous>, transform_indices = @transform_5, window_bounds = array<i64: 64, 32>}, {pipeline_mode = #tpu.pipeline_mode<synchronous>, transform_indices = @transform_6, window_bounds = array<i64: 1, 32>}, {pipeline_mode = #tpu.pipeline_mode<synchronous>, transform_indices = @transform_7, window_bounds = array<i64: 1, 32>}, {pipeline_mode = #tpu.pipeline_mode<synchronous>, transform_indices = @transform_8, window_bounds = array<i64: 32, 96>}, {pipeline_mode = #tpu.pipeline_mode<synchronous>, transform_indices = @transform_9, window_bounds = array<i64: 64, 96>}, {pipeline_mode = #tpu.pipeline_mode<synchronous>, transform_indices = @transform_10, window_bounds = array<i64: 1, 96>}, {pipeline_mode = #tpu.pipeline_mode<synchronous>, transform_indices = @transform_11, window_bounds = array<i64: 32, 96>}, {pipeline_mode = #tpu.pipeline_mode<synchronous>, transform_indices = @transform_12, window_bounds = array<i64: 1, 96>}, {transform_indices = @transform_13, window_bounds = array<i64: 128, 128>}, {transform_indices = @transform_14, window_bounds = array<i64: 1, 128>}, {transform_indices = @transform_15, window_bounds = array<i64: 8, 128>}, {transform_indices = @transform_16, window_bounds = array<i64: 1, 8, 32>}, {transform_indices = @transform_17, window_bounds = array<i64: 1, 8, 8>}]} {
    %c0_i32 = arith.constant 0 : i32
    %0 = arith.cmpi eq, %arg1, %c0_i32 : i32
    %1 = arith.extui %0 : i1 to i32
    %c0_i32_0 = arith.constant 0 : i32
    %2 = arith.cmpi ne, %1, %c0_i32_0 : i32
    scf.if %2 {
      %c0_16 = arith.constant 0 : index
      %c0_17 = arith.constant 0 : index
      %21 = vector.load %arg2[%c0_16, %c0_17] : memref<8x32xf32, #tpu.memory_space<vmem>>, vector<8x32xf32>
      %c0_18 = arith.constant 0 : index
      %c0_19 = arith.constant 0 : index
      %22 = vector.load %arg3[%c0_18, %c0_19] : memref<8x32xf32, #tpu.memory_space<vmem>>, vector<8x32xf32>
      %c0_20 = arith.constant 0 : index
      %c0_21 = arith.constant 0 : index
      %c0_22 = arith.constant 0 : index
      %23 = vector.load %arg4[%c0_20, %c0_21, %c0_22] : memref<8x8x64xf32, #tpu.memory_space<vmem>>, vector<8x8x64xf32>
      %c0_23 = arith.constant 0 : index
      %c0_24 = arith.constant 0 : index
      %24 = vector.load %arg5[%c0_23, %c0_24] : memref<8x8xf32, #tpu.memory_space<vmem>>, vector<8x8xf32>
      %c0_25 = arith.constant 0 : index
      %c0_26 = arith.constant 0 : index
      %25 = vector.load %arg6[%c0_25, %c0_26] : memref<32x32xf32, #tpu.memory_space<vmem>>, vector<32x32xf32>
      %cst_27 = arith.constant dense<0.000000e+00> : vector<8x32xf32>
      %26 = tpu.matmul %22, %25, %cst_27 {dimension_numbers = #tpu.dot_dimension_numbers<[1], [0], [0], [1], [0, 0, 1, 1], [], []>} : vector<8x32xf32>, vector<32x32xf32>, vector<8x32xf32> -> vector<8x32xf32>
      %c0_28 = arith.constant 0 : index
      %c0_29 = arith.constant 0 : index
      %27 = vector.load %arg8[%c0_28, %c0_29] : memref<1x32xf32, #tpu.memory_space<vmem>>, vector<1x32xf32>
      %28 = vector.broadcast %27 : vector<1x32xf32> to vector<8x32xf32>
      %29 = arith.addf %26, %28 : vector<8x32xf32>
      %30 = vector.shape_cast %23 : vector<8x8x64xf32> to vector<64x64xf32>
      %c0_30 = arith.constant 0 : index
      %c0_31 = arith.constant 0 : index
      %31 = vector.load %arg7[%c0_30, %c0_31] : memref<64x32xf32, #tpu.memory_space<vmem>>, vector<64x32xf32>
      %cst_32 = arith.constant dense<0.000000e+00> : vector<64x32xf32>
      %32 = tpu.matmul %30, %31, %cst_32 {dimension_numbers = #tpu.dot_dimension_numbers<[1], [0], [0], [1], [0, 0, 1, 1], [], []>} : vector<64x64xf32>, vector<64x32xf32>, vector<64x32xf32> -> vector<64x32xf32>
      %33 = vector.shape_cast %32 : vector<64x32xf32> to vector<8x8x32xf32>
      %34 = vector.shape_cast %29 : vector<8x32xf32> to vector<8x1x32xf32>
      %35 = vector.broadcast %34 : vector<8x1x32xf32> to vector<8x8x32xf32>
      %36 = arith.addf %33, %35 : vector<8x8x32xf32>
      %37 = math.tanh %36 : vector<8x8x32xf32>
      %c0_33 = arith.constant 0 : index
      %c0_34 = arith.constant 0 : index
      %38 = vector.load %arg9[%c0_33, %c0_34] : memref<1x32xf32, #tpu.memory_space<vmem>>, vector<1x32xf32>
      %39 = vector.shape_cast %38 : vector<1x32xf32> to vector<1x1x32xf32>
      %40 = vector.broadcast %39 : vector<1x1x32xf32> to vector<8x8x32xf32>
      %41 = arith.mulf %37, %40 : vector<8x8x32xf32>
      %cst_35 = arith.constant dense<0.000000e+00> : vector<8x8xf32>
      %42 = vector.multi_reduction <add>, %41, %cst_35 [2] : vector<8x8x32xf32> to vector<8x8xf32>
      %cst_36 = arith.constant 5.000000e-01 : f32
      %43 = vector.broadcast %cst_36 : f32 to vector<8x8xf32>
      %44 = arith.cmpf ogt, %24, %43 : vector<8x8xf32>
      %cst_37 = arith.constant -1.000000e+10 : f32
      %45 = vector.broadcast %cst_37 : f32 to vector<8x8xf32>
      %46 = arith.select %44, %42, %45 : vector<8x8xi1>, vector<8x8xf32>
      %cst_38 = arith.constant dense<0xFF800000> : vector<8xf32>
      %47 = vector.multi_reduction <maximumf>, %46, %cst_38 [1] : vector<8x8xf32> to vector<8xf32>
      %48 = vector.shape_cast %47 : vector<8xf32> to vector<8x1xf32>
      %49 = vector.broadcast %48 : vector<8x1xf32> to vector<8x8xf32>
      %50 = arith.subf %46, %49 : vector<8x8xf32>
      %51 = math.exp %50 : vector<8x8xf32>
      %cst_39 = arith.constant dense<0.000000e+00> : vector<8xf32>
      %52 = vector.multi_reduction <add>, %51, %cst_39 [1] : vector<8x8xf32> to vector<8xf32>
      %53 = vector.shape_cast %52 : vector<8xf32> to vector<8x1xf32>
      %54 = vector.broadcast %53 : vector<8x1xf32> to vector<8x8xf32>
      %55 = arith.divf %51, %54 : vector<8x8xf32>
      %56 = vector.shape_cast %55 : vector<8x8xf32> to vector<8x8x1xf32>
      %57 = vector.broadcast %56 : vector<8x8x1xf32> to vector<8x8x64xf32>
      %58 = arith.mulf %57, %23 : vector<8x8x64xf32>
      %cst_40 = arith.constant dense<0.000000e+00> : vector<8x64xf32>
      %59 = vector.multi_reduction <add>, %58, %cst_40 [1] : vector<8x8x64xf32> to vector<8x64xf32>
      %c0_41 = arith.constant 0 : index
      %c0_42 = arith.constant 0 : index
      %60 = vector.load %arg10[%c0_41, %c0_42] : memref<32x96xf32, #tpu.memory_space<vmem>>, vector<32x96xf32>
      %cst_43 = arith.constant dense<0.000000e+00> : vector<8x96xf32>
      %61 = tpu.matmul %21, %60, %cst_43 {dimension_numbers = #tpu.dot_dimension_numbers<[1], [0], [0], [1], [0, 0, 1, 1], [], []>} : vector<8x32xf32>, vector<32x96xf32>, vector<8x96xf32> -> vector<8x96xf32>
      %c0_44 = arith.constant 0 : index
      %c0_45 = arith.constant 0 : index
      %62 = vector.load %arg11[%c0_44, %c0_45] : memref<64x96xf32, #tpu.memory_space<vmem>>, vector<64x96xf32>
      %cst_46 = arith.constant dense<0.000000e+00> : vector<8x96xf32>
      %63 = tpu.matmul %59, %62, %cst_46 {dimension_numbers = #tpu.dot_dimension_numbers<[1], [0], [0], [1], [0, 0, 1, 1], [], []>} : vector<8x64xf32>, vector<64x96xf32>, vector<8x96xf32> -> vector<8x96xf32>
      %64 = arith.addf %61, %63 : vector<8x96xf32>
      %c0_47 = arith.constant 0 : index
      %c0_48 = arith.constant 0 : index
      %65 = vector.load %arg12[%c0_47, %c0_48] : memref<1x96xf32, #tpu.memory_space<vmem>>, vector<1x96xf32>
      %66 = vector.broadcast %65 : vector<1x96xf32> to vector<8x96xf32>
      %67 = arith.addf %64, %66 : vector<8x96xf32>
      %c0_49 = arith.constant 0 : index
      %c0_50 = arith.constant 0 : index
      %68 = vector.load %arg13[%c0_49, %c0_50] : memref<32x96xf32, #tpu.memory_space<vmem>>, vector<32x96xf32>
      %cst_51 = arith.constant dense<0.000000e+00> : vector<8x96xf32>
      %69 = tpu.matmul %22, %68, %cst_51 {dimension_numbers = #tpu.dot_dimension_numbers<[1], [0], [0], [1], [0, 0, 1, 1], [], []>} : vector<8x32xf32>, vector<32x96xf32>, vector<8x96xf32> -> vector<8x96xf32>
      %c0_52 = arith.constant 0 : index
      %c0_53 = arith.constant 0 : index
      %70 = vector.load %arg14[%c0_52, %c0_53] : memref<1x96xf32, #tpu.memory_space<vmem>>, vector<1x96xf32>
      %71 = vector.broadcast %70 : vector<1x96xf32> to vector<8x96xf32>
      %72 = arith.addf %69, %71 : vector<8x96xf32>
      %73 = vector.extract_strided_slice %67 {offsets = [0, 0], sizes = [8, 32], strides = [1, 1]} : vector<8x96xf32> to vector<8x32xf32>
      %74 = vector.extract_strided_slice %72 {offsets = [0, 0], sizes = [8, 32], strides = [1, 1]} : vector<8x96xf32> to vector<8x32xf32>
      %75 = arith.addf %73, %74 : vector<8x32xf32>
      %76 = arith.negf %75 : vector<8x32xf32>
      %77 = math.exp %76 : vector<8x32xf32>
      %cst_54 = arith.constant 1.000000e+00 : f32
      %78 = vector.broadcast %cst_54 : f32 to vector<8x32xf32>
      %79 = arith.addf %78, %77 : vector<8x32xf32>
      %80 = arith.divf %78, %79 : vector<8x32xf32>
      %81 = vector.extract_strided_slice %67 {offsets = [0, 32], sizes = [8, 32], strides = [1, 1]} : vector<8x96xf32> to vector<8x32xf32>
      %82 = vector.extract_strided_slice %72 {offsets = [0, 32], sizes = [8, 32], strides = [1, 1]} : vector<8x96xf32> to vector<8x32xf32>
      %83 = arith.addf %81, %82 : vector<8x32xf32>
      %84 = arith.negf %83 : vector<8x32xf32>
      %85 = math.exp %84 : vector<8x32xf32>
      %cst_55 = arith.constant 1.000000e+00 : f32
      %86 = vector.broadcast %cst_55 : f32 to vector<8x32xf32>
      %87 = arith.addf %86, %85 : vector<8x32xf32>
      %88 = arith.divf %86, %87 : vector<8x32xf32>
      %89 = vector.extract_strided_slice %67 {offsets = [0, 64], sizes = [8, 32], strides = [1, 1]} : vector<8x96xf32> to vector<8x32xf32>
      %90 = vector.extract_strided_slice %72 {offsets = [0, 64], sizes = [8, 32], strides = [1, 1]} : vector<8x96xf32> to vector<8x32xf32>
      %91 = arith.mulf %80, %90 : vector<8x32xf32>
      %92 = arith.addf %89, %91 : vector<8x32xf32>
      %93 = math.tanh %92 : vector<8x32xf32>
      %cst_56 = arith.constant 1.000000e+00 : f32
      %94 = vector.broadcast %cst_56 : f32 to vector<8x32xf32>
      %95 = arith.subf %94, %88 : vector<8x32xf32>
      %96 = arith.mulf %95, %93 : vector<8x32xf32>
      %97 = arith.mulf %88, %22 : vector<8x32xf32>
      %98 = arith.addf %96, %97 : vector<8x32xf32>
      %c0_57 = arith.constant 0 : index
      %c0_58 = arith.constant 0 : index
      %99 = vector.load %arg20[%c0_57, %c0_58] : memref<8x32xf32, #tpu.memory_space<vmem>>, vector<8x32xf32>
      tpu.vector_store %arg20[%c0_57, %c0_58], %98 {strides = array<i32>} : memref<8x32xf32, #tpu.memory_space<vmem>>, vector<8x32xf32>,
      %c0_59 = arith.constant 0 : index
      %c0_60 = arith.constant 0 : index
      %100 = vector.load %arg21[%c0_59, %c0_60] : memref<8x64xf32, #tpu.memory_space<vmem>>, vector<8x64xf32>
      tpu.vector_store %arg21[%c0_59, %c0_60], %59 {strides = array<i32>} : memref<8x64xf32, #tpu.memory_space<vmem>>, vector<8x64xf32>,
      %c0_61 = arith.constant 0 : index
      %c0_62 = arith.constant 0 : index
      %c0_63 = arith.constant 0 : index
      %101 = vector.load %arg18[%c0_61, %c0_62, %c0_63] : memref<1x8x32xf32, #tpu.memory_space<vmem>>, vector<1x8x32xf32>
      %102 = vector.shape_cast %101 : vector<1x8x32xf32> to vector<8x32xf32>
      %103 = vector.shape_cast %98 : vector<8x32xf32> to vector<1x8x32xf32>
      tpu.vector_store %arg18[%c0_61, %c0_62, %c0_63], %103 {strides = array<i32>} : memref<1x8x32xf32, #tpu.memory_space<vmem>>, vector<1x8x32xf32>,
      %c0_64 = arith.constant 0 : index
      %c0_65 = arith.constant 0 : index
      %c0_66 = arith.constant 0 : index
      %104 = vector.load %arg19[%c0_64, %c0_65, %c0_66] : memref<1x8x8xf32, #tpu.memory_space<vmem>>, vector<1x8x8xf32>
      %105 = vector.shape_cast %104 : vector<1x8x8xf32> to vector<8x8xf32>
      %106 = vector.shape_cast %55 : vector<8x8xf32> to vector<1x8x8xf32>
      tpu.vector_store %arg19[%c0_64, %c0_65, %c0_66], %106 {strides = array<i32>} : memref<1x8x8xf32, #tpu.memory_space<vmem>>, vector<1x8x8xf32>,
    } else {
    }
    %c0 = arith.constant 0 : index
    %c0_1 = arith.constant 0 : index
    %3 = vector.load %arg20[%c0, %c0_1] : memref<8x32xf32, #tpu.memory_space<vmem>>, vector<8x32xf32>
    %4 = arith.truncf %3 : vector<8x32xf32> to vector<8x32xbf16>
    %c0_2 = arith.constant 0 : index
    %c0_3 = arith.constant 0 : index
    %5 = vector.load %arg21[%c0_2, %c0_3] : memref<8x64xf32, #tpu.memory_space<vmem>>, vector<8x64xf32>
    %6 = arith.truncf %5 : vector<8x64xf32> to vector<8x64xbf16>
    %c0_4 = arith.constant 0 : index
    %c0_5 = arith.constant 0 : index
    %7 = vector.load %arg2[%c0_4, %c0_5] : memref<8x32xf32, #tpu.memory_space<vmem>>, vector<8x32xf32>
    %8 = arith.truncf %7 : vector<8x32xf32> to vector<8x32xbf16>
    %c0_6 = arith.constant 0 : index
    %c0_7 = arith.constant 0 : index
    %9 = vector.load %arg15[%c0_6, %c0_7] : memref<128x128xbf16, #tpu.memory_space<vmem>>, vector<32x128xbf16>
    %cst = arith.constant dense<0.000000e+00> : vector<8x128xf32>
    %10 = tpu.matmul %4, %9, %cst {dimension_numbers = #tpu.dot_dimension_numbers<[1], [0], [0], [1], [0, 0, 1, 1], [], []>} : vector<8x32xbf16>, vector<32x128xbf16>, vector<8x128xf32> -> vector<8x128xf32>
    %c32 = arith.constant 32 : index
    %c0_8 = arith.constant 0 : index
    %11 = vector.load %arg15[%c32, %c0_8] : memref<128x128xbf16, #tpu.memory_space<vmem>>, vector<64x128xbf16>
    %cst_9 = arith.constant dense<0.000000e+00> : vector<8x128xf32>
    %12 = tpu.matmul %6, %11, %cst_9 {dimension_numbers = #tpu.dot_dimension_numbers<[1], [0], [0], [1], [0, 0, 1, 1], [], []>} : vector<8x64xbf16>, vector<64x128xbf16>, vector<8x128xf32> -> vector<8x128xf32>
    %13 = arith.addf %10, %12 : vector<8x128xf32>
    %c96 = arith.constant 96 : index
    %c0_10 = arith.constant 0 : index
    %14 = vector.load %arg15[%c96, %c0_10] : memref<128x128xbf16, #tpu.memory_space<vmem>>, vector<32x128xbf16>
    %cst_11 = arith.constant dense<0.000000e+00> : vector<8x128xf32>
    %15 = tpu.matmul %8, %14, %cst_11 {dimension_numbers = #tpu.dot_dimension_numbers<[1], [0], [0], [1], [0, 0, 1, 1], [], []>} : vector<8x32xbf16>, vector<32x128xbf16>, vector<8x128xf32> -> vector<8x128xf32>
    %16 = arith.addf %13, %15 : vector<8x128xf32>
    %c0_12 = arith.constant 0 : index
    %c0_13 = arith.constant 0 : index
    %17 = vector.load %arg16[%c0_12, %c0_13] : memref<1x128xf32, #tpu.memory_space<vmem>>, vector<1x128xf32>
    %18 = vector.broadcast %17 : vector<1x128xf32> to vector<8x128xf32>
    %19 = arith.addf %16, %18 : vector<8x128xf32>
    %c0_14 = arith.constant 0 : index
    %c0_15 = arith.constant 0 : index
    %20 = vector.load %arg17[%c0_14, %c0_15] : memref<8x128xf32, #tpu.memory_space<vmem>>, vector<8x128xf32>
    tpu.vector_store %arg17[%c0_14, %c0_15], %19 {strides = array<i32>} : memref<8x128xf32, #tpu.memory_space<vmem>>, vector<8x128xf32>,
    return
  }
  func.func @transform_0(%arg0: i32, %arg1: i32) -> (i32, i32) {
    %c0_i32 = arith.constant 0 : i32
    %c0_i32_0 = arith.constant 0 : i32
    %c0_i32_1 = arith.constant 0 : i32
    return %c0_i32, %c0_i32_0 : i32, i32
  }
  func.func @transform_1(%arg0: i32, %arg1: i32) -> (i32, i32) {
    %c0_i32 = arith.constant 0 : i32
    %c0_i32_0 = arith.constant 0 : i32
    %c0_i32_1 = arith.constant 0 : i32
    return %c0_i32, %c0_i32_0 : i32, i32
  }
  func.func @transform_2(%arg0: i32, %arg1: i32) -> (i32, i32, i32) {
    %c0_i32 = arith.constant 0 : i32
    %c0_i32_0 = arith.constant 0 : i32
    %c0_i32_1 = arith.constant 0 : i32
    %c0_i32_2 = arith.constant 0 : i32
    return %c0_i32, %c0_i32_0, %c0_i32_1 : i32, i32, i32
  }
  func.func @transform_3(%arg0: i32, %arg1: i32) -> (i32, i32) {
    %c0_i32 = arith.constant 0 : i32
    %c0_i32_0 = arith.constant 0 : i32
    %c0_i32_1 = arith.constant 0 : i32
    return %c0_i32, %c0_i32_0 : i32, i32
  }
  func.func @transform_4(%arg0: i32, %arg1: i32) -> (i32, i32) {
    %c0_i32 = arith.constant 0 : i32
    %c0_i32_0 = arith.constant 0 : i32
    %c0_i32_1 = arith.constant 0 : i32
    return %c0_i32, %c0_i32_0 : i32, i32
  }
  func.func @transform_5(%arg0: i32, %arg1: i32) -> (i32, i32) {
    %c0_i32 = arith.constant 0 : i32
    %c0_i32_0 = arith.constant 0 : i32
    %c0_i32_1 = arith.constant 0 : i32
    return %c0_i32, %c0_i32_0 : i32, i32
  }
  func.func @transform_6(%arg0: i32, %arg1: i32) -> (i32, i32) {
    %c0_i32 = arith.constant 0 : i32
    %c0_i32_0 = arith.constant 0 : i32
    %c0_i32_1 = arith.constant 0 : i32
    return %c0_i32, %c0_i32_0 : i32, i32
  }
  func.func @transform_7(%arg0: i32, %arg1: i32) -> (i32, i32) {
    %c0_i32 = arith.constant 0 : i32
    %c0_i32_0 = arith.constant 0 : i32
    %c0_i32_1 = arith.constant 0 : i32
    return %c0_i32, %c0_i32_0 : i32, i32
  }
  func.func @transform_8(%arg0: i32, %arg1: i32) -> (i32, i32) {
    %c0_i32 = arith.constant 0 : i32
    %c0_i32_0 = arith.constant 0 : i32
    %c0_i32_1 = arith.constant 0 : i32
    return %c0_i32, %c0_i32_0 : i32, i32
  }
  func.func @transform_9(%arg0: i32, %arg1: i32) -> (i32, i32) {
    %c0_i32 = arith.constant 0 : i32
    %c0_i32_0 = arith.constant 0 : i32
    %c0_i32_1 = arith.constant 0 : i32
    return %c0_i32, %c0_i32_0 : i32, i32
  }
  func.func @transform_10(%arg0: i32, %arg1: i32) -> (i32, i32) {
    %c0_i32 = arith.constant 0 : i32
    %c0_i32_0 = arith.constant 0 : i32
    %c0_i32_1 = arith.constant 0 : i32
    return %c0_i32, %c0_i32_0 : i32, i32
  }
  func.func @transform_11(%arg0: i32, %arg1: i32) -> (i32, i32) {
    %c0_i32 = arith.constant 0 : i32
    %c0_i32_0 = arith.constant 0 : i32
    %c0_i32_1 = arith.constant 0 : i32
    return %c0_i32, %c0_i32_0 : i32, i32
  }
  func.func @transform_12(%arg0: i32, %arg1: i32) -> (i32, i32) {
    %c0_i32 = arith.constant 0 : i32
    %c0_i32_0 = arith.constant 0 : i32
    %c0_i32_1 = arith.constant 0 : i32
    return %c0_i32, %c0_i32_0 : i32, i32
  }
  func.func @transform_13(%arg0: i32, %arg1: i32) -> (i32, i32) {
    %c1_i32 = arith.constant 1 : i32
    %0 = arith.muli %arg0, %c1_i32 : i32
    %1 = arith.addi %0, %arg1 : i32
    %c0_i32 = arith.constant 0 : i32
    %c0_i32_0 = arith.constant 0 : i32
    return %c0_i32, %1 : i32, i32
  }
  func.func @transform_14(%arg0: i32, %arg1: i32) -> (i32, i32) {
    %c1_i32 = arith.constant 1 : i32
    %0 = arith.muli %arg0, %c1_i32 : i32
    %1 = arith.addi %0, %arg1 : i32
    %c0_i32 = arith.constant 0 : i32
    %c0_i32_0 = arith.constant 0 : i32
    return %c0_i32, %1 : i32, i32
  }
  func.func @transform_15(%arg0: i32, %arg1: i32) -> (i32, i32) {
    %c1_i32 = arith.constant 1 : i32
    %0 = arith.muli %arg0, %c1_i32 : i32
    %1 = arith.addi %0, %arg1 : i32
    %c0_i32 = arith.constant 0 : i32
    %c0_i32_0 = arith.constant 0 : i32
    return %c0_i32, %1 : i32, i32
  }
  func.func @transform_16(%arg0: i32, %arg1: i32) -> (i32, i32, i32) {
    %c0_i32 = arith.constant 0 : i32
    %c0_i32_0 = arith.constant 0 : i32
    %c0_i32_1 = arith.constant 0 : i32
    return %arg0, %c0_i32, %c0_i32_0 : i32, i32, i32
  }
  func.func @transform_17(%arg0: i32, %arg1: i32) -> (i32, i32, i32) {
    %c0_i32 = arith.constant 0 : i32
    %c0_i32_0 = arith.constant 0 : i32
    %c0_i32_1 = arith.constant 0 : i32
    return %arg0, %c0_i32, %c0_i32_0 : i32, i32, i32
  }
}

</mosaic_0001>

<bundles_post_ra>
// kernel: decoder_step.1
= control target key start
LH: loop header
LB: loop body
LE: loop exit
PB: predicated region body
PF: predicated region fallthrough
CT: control target
= control target key end

     0   :  { %s2128_s0 = inlined_call_operand.vmem [shape: f32[8,32], index: 0, kind: input, shape index: {}]   ;;  %s2129_s1 = inlined_call_operand.vmem [shape: f32[8,32], index: 1, kind: input, shape index: {}]   ;;  %s2130_s2 = inlined_call_operand.vmem [shape: f32[8,8,64], index: 2, kind: input, shape index: {}]   ;;  %s2131_s3 = inlined_call_operand.hbm [shape: f32[8,8], index: 3, kind: input, shape index: {}]   ;;  %s2132_s4 = inlined_call_operand.hbm [shape: f32[32,32], index: 4, kind: input, shape index: {}]   ;;  %s2133_s5 = inlined_call_operand.vmem [shape: f32[64,32], index: 5, kind: input, shape index: {}]   ;;  %s2134_s6 = inlined_call_operand.vmem [shape: f32[1,32], index: 6, kind: input, shape index: {}]   ;;  %s2135_s7 = inlined_call_operand.vmem [shape: f32[1,32], index: 7, kind: input, shape index: {}]   ;;  %s2136_s8 = inlined_call_operand.vmem [shape: f32[32,96], index: 8, kind: input, shape index: {}]   ;;  %s2137_s9 = inlined_call_operand.vmem [shape: f32[64,96], index: 9, kind: input, shape index: {}]   ;;  %s2138_s10 = inlined_call_operand.vmem [shape: f32[1,96], index: 10, kind: input, shape index: {}]   ;;  %s2139_s11 = inlined_call_operand.hbm [shape: f32[32,96], index: 11, kind: input, shape index: {}]   ;;  %s2140_s12 = inlined_call_operand.hbm [shape: f32[1,96], index: 12, kind: input, shape index: {}]   ;;  %s2141_s13 = inlined_call_operand.vmem [shape: bf16[128,128], index: 13, kind: input, shape index: {}]   ;;  %s2142_s14 = inlined_call_operand.hbm [shape: f32[1,128], index: 14, kind: input, shape index: {}]   ;;  %s2143_s15 = inlined_call_operand.vmem [shape: f32[8,128], index: 15, kind: output, shape index: {0}]   ;;  %s2144_s16 = inlined_call_operand.vmem [shape: f32[1,8,32], index: 16, kind: output, shape index: {1}]   ;;  %s2145_s17 = inlined_call_operand.vmem [shape: f32[1,8,8], index: 17, kind: output, shape index: {2}]  }
   0x1   :  { %2146 = sst [smem:[#allocation15_spill]] %s2128_s0 }
   0x2   :  { %2147 = sst [smem:[#allocation16_spill]] %s2129_s1 }
   0x3   :  { %2148 = sst [smem:[#allocation17_spill]] %s2143_s15 }
   0x4   :  { %23 = vsyncpa [#allocation5], 0 }
   0x5   :  { %24 = vsyncpa [#allocation7], 0 }
   0x6   :  { %25 = vsyncpa [#allocation10], 0  ;;  %s1670_s24 = smov [#allocation6]   ;;  %s1554_s28 = scalar_lea.hbm %s2132_s4, 512 }
   0x7   :  { %s47_s25 = sshll.u32 %s1670_s24, 4  ;;  %p1555_p0 = scmp.ne.s32.totalorder %s2132_s4, %s1554_s28  ;;  %s48_s25 = int_to_ptr.vmem [resolvable:$true] %s47_s25 }
   0x8   :  { %p1558_p1 = scmp.lt.u32.totalorder %s1554_s28, %s2132_s4 }
   0xa   :  { %p1560_p2 = pnand %p1558_p1, %p1555_p0 }
   0xc   :  { %1563 = shalt.err (!%p1560_p2)
}
   0xd   :  { %s1564_s19 = scalar_lea.vmem %s48_s25, 512  ;;  %p1569_p4 = scmp.lt.s32.totalorder %s48_s25, %s48_s25 }
   0xe   :  { %p1565_p3 = scmp.ne.s32.totalorder %s48_s25, %s1564_s19  ;;  %p1570_p5 = scmp.lt.s32.totalorder %s1564_s19, %s1564_s19 }
  0x10   :  { %p1571_p6 = por %p1570_p5, %p1569_p4 }
  0x12   :  { %p1572_p7 = pnand %p1571_p6, %p1565_p3 }
  0x14   :  { %1575 = shalt.err (!%p1572_p7)
}
  0x15   :  { %s1671_s1 = smov 128   ;;  %s1672_s20 = smov 8  }
  0x16   :  { %53 = dma.hbm_to_vmem [thread:$0]  %s2132_s4, 512, %s48_s25, [#allocation7], %s1671_s1, %s1671_s1, %s1672_s20  }
  0x17   :  { %s1673_s23 = smov [#allocation9]   ;;  %s1674_s26 = smov [#allocation4]  }
  0x18   :  { %s84_s24 = sshll.u32 %s1673_s23, 4  ;;  %s38_s27 = sshll.u32 %s1674_s26, 4  ;;  %s85_s24 = int_to_ptr.vmem [resolvable:$true] %s84_s24  ;;  %s39_s27 = int_to_ptr.vmem [resolvable:$true] %s38_s27 }
  0x19   :  { %s1576_s0 = scalar_lea.hbm %s2140_s12, 16 }
  0x1a   :  { %p1577_p8 = scmp.ne.s32.totalorder %s2140_s12, %s1576_s0  ;;  %p1580_p9 = scmp.lt.u32.totalorder %s1576_s0, %s2140_s12 }
  0x1c   :  { %p1582_p10 = pnand %p1580_p9, %p1577_p8 }
  0x1e   :  { %1585 = shalt.err (!%p1582_p10)
}
  0x1f   :  { %s1586_s4 = scalar_lea.vmem %s85_s24, 16  ;;  %s1590_s25 = scalar_lea.vmem %s85_s24, 32 }
  0x20   :  { %p1587_p11 = scmp.ne.s32.totalorder %s85_s24, %s1586_s4  ;;  %p1591_p12 = scmp.lt.s32.totalorder %s85_s24, %s85_s24 }
  0x21   :  { %p1592_p13 = scmp.lt.s32.totalorder %s1590_s25, %s1586_s4 }
  0x23   :  { %p1593_p0 = por %p1592_p13, %p1591_p12 }
  0x25   :  { %p1594_p1 = pnand %p1593_p0, %p1587_p11 }
  0x27   :  { %1597 = shalt.err (!%p1594_p1)
}
  0x28   :  { %87 = dma.hbm_to_vmem [thread:$0]  %s2140_s12, 16, %s85_s24, [#allocation10]  }
  0x29   :  { %s1598_s15 = scalar_lea.hbm %s2131_s3, 128 }
  0x2a   :  { %p1599_p2 = scmp.ne.s32.totalorder %s2131_s3, %s1598_s15  ;;  %p1602_p3 = scmp.lt.u32.totalorder %s1598_s15, %s2131_s3 }
  0x2c   :  { %p1604_p4 = pnand %p1602_p3, %p1599_p2 }
  0x2e   :  { %1607 = shalt.err (!%p1604_p4)
}
  0x2f   :  { %s1608_s18 = scalar_lea.vmem %s39_s27, 128  ;;  %p1613_p6 = scmp.lt.s32.totalorder %s39_s27, %s39_s27 }
  0x30   :  { %p1609_p5 = scmp.ne.s32.totalorder %s39_s27, %s1608_s18  ;;  %p1614_p7 = scmp.lt.s32.totalorder %s1608_s18, %s1608_s18 }
  0x32   :  { %p1615_p8 = por %p1614_p7, %p1613_p6 }
  0x34   :  { %p1616_p9 = pnand %p1615_p8, %p1609_p5 }
  0x36   :  { %1619 = shalt.err (!%p1616_p9)
}
  0x37   :  { %41 = dma.hbm_to_vmem [thread:$0]  %s2131_s3, 128, %s39_s27, [#allocation5]  }
  0x38   :  { %s1675_s19 = smov [#allocation8]   ;;  %s1676_s25 = smov [#allocation11]  }
  0x39   :  { %s71_s4 = sshll.u32 %s1675_s19, 4  ;;  %s105_s21 = sshll.u32 %s1676_s25, 4  ;;  %s72_s4 = int_to_ptr.vmem [resolvable:$true] %s71_s4  ;;  %s106_s21 = int_to_ptr.vmem [resolvable:$true] %s105_s21 }
  0x3a   :  { %s1620_s26 = scalar_lea.hbm %s2139_s11, 512 }
  0x3b   :  { %p1621_p10 = scmp.ne.s32.totalorder %s2139_s11, %s1620_s26  ;;  %p1624_p11 = scmp.lt.u32.totalorder %s1620_s26, %s2139_s11 }
  0x3d   :  { %p1626_p12 = pnand %p1624_p11, %p1621_p10 }
  0x3f   :  { %1629 = shalt.err (!%p1626_p12)
}
  0x40   :  { %s1630_s3 = scalar_lea.vmem %s72_s4, 512  ;;  %p1635_p0 = scmp.lt.s32.totalorder %s72_s4, %s72_s4 }
  0x41   :  { %p1631_p13 = scmp.ne.s32.totalorder %s72_s4, %s1630_s3  ;;  %p1636_p1 = scmp.lt.s32.totalorder %s1630_s3, %s1630_s3 }
  0x43   :  { %p1637_p2 = por %p1636_p1, %p1635_p0 }
  0x45   :  { %p1638_p3 = pnand %p1637_p2, %p1631_p13 }
  0x47   :  { %1641 = shalt.err (!%p1638_p3)
}
  0x48   :  { %77 = dma.hbm_to_vmem [thread:$0]  %s2139_s11, 512, %s72_s4, [#allocation7], %s1671_s1, %s1671_s1, %s1672_s20  }
  0x49   :  { %s1642_s24 = scalar_lea.hbm %s2142_s14, 16 }
  0x4a   :  { %p1643_p4 = scmp.ne.s32.totalorder %s2142_s14, %s1642_s24  ;;  %p1646_p5 = scmp.lt.u32.totalorder %s1642_s24, %s2142_s14 }
  0x4c   :  { %p1648_p6 = pnand %p1646_p5, %p1643_p4 }
  0x4e   :  { %1651 = shalt.err (!%p1648_p6)
}
  0x4f   :  { %s1652_s26 = scalar_lea.vmem %s106_s21, 16  ;;  %s1656_s15 = scalar_lea.vmem %s106_s21, 32 }
  0x50   :  { %p1653_p7 = scmp.ne.s32.totalorder %s106_s21, %s1652_s26  ;;  %p1657_p8 = scmp.lt.s32.totalorder %s106_s21, %s106_s21 }
  0x51   :  { %p1658_p9 = scmp.lt.s32.totalorder %s1656_s15, %s1652_s26 }
  0x53   :  { %p1659_p10 = por %p1658_p9, %p1657_p8 }
  0x55   :  { %p1660_p11 = pnand %p1659_p10, %p1653_p7 }
  0x57   :  { %1663 = shalt.err (!%p1660_p11)
}
  0x58   :  { %108 = dma.hbm_to_vmem [thread:$0]  %s2142_s14, 16, %s106_s21, [#allocation10]  }
  0x59   :  { %1664 = dma.done.wait [#allocation5], 128  }
  0x5a   :  { %1665 = vsyncadd [#allocation5], 4294967168 }
  0x5b   :  { %1666 = dma.done.wait [#allocation7], 1024  }
  0x5c   :  { %1667 = vsyncadd [#allocation7], 4294966272 }
  0x5d   :  { %1668 = dma.done.wait [#allocation10], 32  }
  0x5e   :  { %1669 = vsyncadd [#allocation10], 4294967264  ;;  %v1677_v0 = vmov 0.0|0.0   ;;  %vm1678_vm0 = vmmov 0   ;;  %v1679_v1 = vmov 0.0   ;;  %v163_v2 = vld [vmem:[#allocation6] sm:$0xff]  ;;  %v391_v31 = vlaneseq }
  0x5f   :  { %1460 = vmatprep.subr.bf16.mxu0 %v1677_v0  ;;  %1360 = vmatprep.mubr.msk.f32.mxu0 %vm1678_vm0, %v1679_v1  ;;  %v164_v3 = vld [vmem:[#allocation6 + $0x8] sm:$0xff]  ;;  %v249_v6 = vld [vmem:[%s2133_s5 + $0x8] sm:$0xff]  ;;  %v166_v8 = vld [vmem:[#allocation6 + $0x18] sm:$0xff]  ;;  %vm256_vm1 = vcmask 523264   ;;  %s2149_s23 = sld [smem:[#allocation16_spill]]  ;;  %vm174_vm2 = vcmask 261120  }
  0x60   :  { %v248_v4 = vld [vmem:[%s2133_s5] sm:$0xff]  ;;  %v1461_v5 = vpack.c.bf16 %v164_v3, %v163_v2  ;;  %v165_v7 = vld [vmem:[#allocation6 + $0x10] sm:$0xff]  ;;  %v250_v10 = vld [vmem:[%s2133_s5 + $0x10] sm:$0xff]  ;;  %v1680_v29 = vmov 1966171168   ;;  %v1938_v33 = vshrl.u32 %v391_v31, 7 }
  0x61   :  { %v1466_v9 = vpack.c.bf16 %v249_v6, %v248_v4  ;;  %v251_v11 = vld [vmem:[%s2133_s5 + $0x18] sm:$0xff]  ;;  %v1464_v12 = vpack.c.bf16 %v166_v8, %v165_v7  ;;  %v252_v14 = vld [vmem:[%s2133_s5 + $0x20] sm:$0xff]  ;;  %v253_v15 = vld [vmem:[%s2133_s5 + $0x28] sm:$0xff]  ;;  %v389_v30 = vunpack.c.l.s4 %v1680_v29  ;;  %vm574_vm3 = vcmask 1041409   ;;  %s1681_s30 = smov 64   ;;  %s1683_s21 = smov 96  }
  0x62   :  { %1462 = vmatpush3.bf16.msra.mxu0 %v1461_v5  ;;  %v1470_v13 = vpack.c.bf16 %v251_v11, %v250_v10  ;;  %v1865_v16 = vld [vmem:[%s2130_s2] sm:$0xff]  ;;  %v1474_v18 = vpack.c.bf16 %v253_v15, %v252_v14  ;;  %v254_v19 = vld [vmem:[%s2133_s5 + $0x30] sm:$0xff]  ;;  %v255_v20 = vld [vmem:[%s2133_s5 + $0x38] sm:$0xff]  ;;  %v1945_v41 = vsub.s32 0, %v1938_v33  ;;  %vm576_vm4 = vcmask 1042434   ;;  %s2151_s19 = sld [smem:[#allocation17_spill]] }
  0x63   :  { %1467 = vmatprep.subr.bf16.mxu1 %v1466_v9  ;;  %1463 = vmatprep.subr.bf16.mxu0 %v1677_v0  ;;  %v1478_v21 = vpack.c.bf16 %v255_v20, %v254_v19  ;;  %v1888_v22 = vld [vmem:[%s2130_s2 + $0x8] sm:$0xff]  ;;  %v1893_v23 = vld [vmem:[%s2130_s2 + $0x10] sm:$0xff]  ;;  %v1903_v24 = vld [vmem:[%s2130_s2 + $0x18] sm:$0xff]  ;;  %v390_v32 = vunpack.c.0.s8 %v389_v30  ;;  %vm578_vm5 = vcmask 1043459   ;;  %vm580_vm6 = vcmask 1044484  }
  0x64   :  { %1469 = vmatpush3.bf16.msra.mxu1 %v1466_v9  ;;  %1379 = vmatprep.mubr.msk.f32.mxu1 %vm256_vm1, %v1865_v16  ;;  %v1908_v25 = vld [vmem:[%s2130_s2 + $0x20] sm:$0xff]  ;;  %v1917_v26 = vld [vmem:[%s2130_s2 + $0x28] sm:$0xff]  ;;  %v1922_v27 = vld [vmem:[%s2130_s2 + $0x30] sm:$0xff]  ;;  %vm582_vm7 = vcmask 1045509   ;;  %vm584_vm8 = vcmask 1046534   ;;  %vm586_vm9 = vcmask 1047559  }
  0x65   :  { %1471 = vmatprep.subr.bf16.mxu1 %v1470_v13  ;;  %v1872_v17 = vld [vmem:[%s2149_s23] sm:$0xff]  ;;  %v1931_v28 = vld [vmem:[%s2130_s2 + $0x38] sm:$0xff]  ;;  %v393_v35 = vsub.s32 %v390_v32, %v1938_v33  ;;  %vm590_vm11 = vcmask 64512   ;;  %s2150_s23 = sld [smem:[#allocation15_spill]] }
  0x66   :  { %1465 = vmatpush3.bf16.msra.mxu0 %v1464_v12  ;;  %v1272_v34 = vld [vmem:[%s2134_s6] ss:$0 sm:$0xff] }
  0x67   :  { %1482 = vmatprep.subr.bf16.mxu0 %v1677_v0  ;;  %v1282_v12 = vld [vmem:[%s2135_s7] ss:$0 sm:$0xff] }
  0x68   :  { %1473 = vmatpush3.bf16.msra.mxu1 %v1470_v13 }
  0x69   :  { %1361 = vmatmul.mubr.msk.f32.vlgmr.msra.gmra.mrb[0].mxu0 %vm174_vm2, %v1872_v17  ;;  %1475 = vmatprep.subr.bf16.mxu1 %v1474_v18 }
  0x6a   :  { %1407 = vmatprep.mubr.msk.f32.mxu0 %vm1678_vm0, %v1679_v1 }
  0x6c   :  { %1477 = vmatpush3.bf16.msra.mxu1 %v1474_v18 }
  0x6d   :  { %1479 = vmatprep.subr.bf16.mxu1 %v1478_v21 }
  0x70   :  { %1481 = vmatpush3.bf16.msra.mxu1 %v1478_v21 }
  0x71   :  { %1500 = vmatprep.subr.bf16.mxu1 %v1677_v0 }
  0x73   :  { %1380 = vmatmul.mubr.msk.f32.vlgmr.msra.gmra.mrb[0].mxu1 %vm256_vm1, %v1888_v22 }
  0x74   :  { %1382 = vmatprep.mubr.msk.f32.mxu1 %vm256_vm1, %v1893_v23 }
  0x77   :  { %1383 = vmatmul.mubr.msk.f32.gmra.mrb[2].mxu1 %vm256_vm1, %v1903_v24 }
  0x78   :  { %1385 = vmatprep.mubr.msk.f32.mxu1 %vm256_vm1, %v1908_v25 }
  0x7b   :  { %1386 = vmatmul.mubr.msk.f32.gmra.mrb[4].mxu1 %vm256_vm1, %v1917_v26 }
  0x7c   :  { %1388 = vmatprep.mubr.msk.f32.mxu1 %vm256_vm1, %v1922_v27 }
  0x7f   :  { %1389 = vmatmul.mubr.msk.f32.gmra.mrb[6].mxu1 %vm256_vm1, %v1931_v28 }
  0x80   :  { %1429 = vmatprep.mubr.msk.f32.mxu1 %vm1678_vm0, %v1679_v1 }
 0x13c   :  { %v244_v36 = vpop.f32.mrb[0].mxu0 }
 0x13d   :  { %v245_v37 = vadd.f32 %v1272_v34, %v244_v36  ;;  %v1362_v38 = vpop.f32.mrb[1].mxu0 }
 0x13f   :  { %v387_v39 = vcombine.high %v245_v37, %v245_v37  ;;  %v394_v40 = vrot.slane %v245_v37, %v393_v35 }
 0x141   :  { %v401_v42 = vrot.slane %v387_v39, %v393_v35  ;;  %v402_v43 = vcombine.high %v394_v40, %v394_v40  ;;  %v410_v44 = vrot.slane %v394_v40, %v393_v35 }
 0x143   :  { %v424_v45 = vrot.slane %v402_v43, %v393_v35  ;;  %v439_v46 = vrot.slane %v410_v44, %v1945_v41  ;;  %v403_v49 = vcombine.high %v401_v42, %v401_v42  ;;  %v432_v51 = vcombine.high %v410_v44, %v410_v44 }
 0x144   :  { %v417_v59 = vrot.slane %v401_v42, %v393_v35 }
 0x145   :  { %v443_v47 = vrot.slane %v424_v45, %v1945_v41  ;;  %v434_v48 = vcombine.high %v424_v45, %v424_v45  ;;  %v431_v56 = vrot.slane %v403_v49, %v393_v35  ;;  %v447_v58 = vrot.slane %v432_v51, %v1945_v41 }
 0x146   :  { %v1381_v50 = vpop.f32.mrb[0].mxu1  ;;  %v455_v4 = vrot.slane %v417_v59, %v1945_v41  ;;  %v433_v5 = vcombine.high %v417_v59, %v417_v59 }
 0x147   :  { %v477_v52 = vadd.f32 %v1381_v50, %v443_v47  ;;  %v347_v53 = vpop.f32.mrb[1].mxu1  ;;  %v451_v54 = vrot.slane %v434_v48, %v1945_v41  ;;  %v459_v63 = vrot.slane %v431_v56, %v1945_v41  ;;  %v435_v2 = vcombine.high %v431_v56, %v431_v56 }
 0x148   :  { %v476_v55 = vadd.f32 %v439_v46, %v347_v53  ;;  %v463_v11 = vrot.slane %v433_v5, %v1945_v41 }
 0x149   :  { %1528 = vtanh.f32 %v477_v52  ;;  %v467_v9 = vrot.slane %v435_v2, %v1945_v41  ;;  %v541_v52 = vand.u32 127, %v391_v31 }
 0x14a   :  { %1530 = vtanh.f32 %v476_v55  ;;  %v1384_v57 = vpop.f32.mrb[2].mxu1 }
 0x14b   :  { %v479_v60 = vadd.f32 %v1384_v57, %v451_v54  ;;  %v357_v61 = vpop.f32.mrb[3].mxu1  ;;  %v544_v54 = vsub.s32 %v541_v52, %v1938_v33 }
 0x14c   :  { %v478_v62 = vadd.f32 %v447_v58, %v357_v61 }
 0x14d   :  { %1532 = vtanh.f32 %v479_v60 }
 0x14e   :  { %1534 = vtanh.f32 %v478_v62  ;;  %v1387_v3 = vpop.f32.mrb[4].mxu1 }
 0x14f   :  { %v481_v6 = vadd.f32 %v1387_v3, %v459_v63  ;;  %v367_v7 = vpop.f32.mrb[5].mxu1 }
 0x150   :  { %v480_v8 = vadd.f32 %v455_v4, %v367_v7 }
 0x151   :  { %1536 = vtanh.f32 %v481_v6 }
 0x152   :  { %1538 = vtanh.f32 %v480_v8  ;;  %v1390_v10 = vpop.f32.mrb[6].mxu1 }
 0x153   :  { %v1529_v13 = vpop.eup %1528  ;;  %v483_v14 = vadd.f32 %v1390_v10, %v467_v9  ;;  %v377_v15 = vpop.f32.mrb[7].mxu1  ;;  %v162_v9 = vld [vmem:[#allocation4] sm:$0xff] }
 0x154   :  { %v1531_v18 = vpop.eup %1530  ;;  %v482_v19 = vadd.f32 %v463_v11, %v377_v15  ;;  %v500_v30 = vmul.f32 %v1529_v13, %v1282_v12  ;;  %vm531_vm10 = vcmp.gt.f32.partialorder %v162_v9, 0.5 }
 0x155   :  { %1540 = vtanh.f32 %v483_v14  ;;  %v499_v20 = vmul.f32 %v1531_v18, %v1282_v12 }
 0x156   :  { %1542 = vtanh.f32 %v482_v19  ;;  %v510_v38 = vsel %vm174_vm2, %v500_v30, 0.0 }
 0x157   :  { %v1533_v21 = vpop.eup %1532  ;;  %v507_v29 = vsel %vm174_vm2, %v499_v20, 0.0 }
 0x158   :  { %v1535_v32 = vpop.eup %1534  ;;  %508 = vadd.xlane.f32.xlu0 %v507_v29  ;;  %v502_v34 = vmul.f32 %v1533_v21, %v1282_v12 }
 0x159   :  { %v501_v36 = vmul.f32 %v1535_v32, %v1282_v12  ;;  %v902_v32 = vld [vmem:[#allocation8] sm:$0xff] }
 0x15a   :  { %v516_v35 = vsel %vm174_vm2, %v502_v34, 0.0  ;;  %v903_v34 = vld [vmem:[#allocation8 + $0x8] sm:$0xff] }
 0x15b   :  { %v1537_v37 = vpop.eup %1536  ;;  %517 = vadd.xlane.f32.xlu1 %v516_v35  ;;  %v513_v42 = vsel %vm174_vm2, %v501_v36, 0.0  ;;  %v904_v35 = vld [vmem:[#allocation8 + $0x10] sm:$0xff]  ;;  %v1501_v36 = vpack.c.bf16 %v903_v34, %v902_v32 }
 0x15c   :  { %v1539_v39 = vpop.eup %1538  ;;  %511 = vadd.xlane.f32.xlu0 %v510_v38  ;;  %v504_v43 = vmul.f32 %v1537_v37, %v1282_v12  ;;  %v905_v37 = vld [vmem:[#allocation8 + $0x18] sm:$0xff] }
 0x15d   :  { %v503_v40 = vmul.f32 %v1539_v39, %v1282_v12  ;;  %1502 = vmatpush3.bf16.msra.mxu1 %v1501_v36  ;;  %v1504_v38 = vpack.c.bf16 %v905_v37, %v904_v35 }
 0x15e   :  { %v522_v48 = vsel %vm174_vm2, %v504_v43, 0.0  ;;  %1503 = vmatprep.subr.bf16.mxu1 %v1677_v0 }
 0x15f   :  { %v1541_v44 = vpop.eup %1540  ;;  %514 = vadd.xlane.f32.xlu1 %v513_v42  ;;  %v519_v45 = vsel %vm174_vm2, %v503_v40, 0.0  ;;  %v611_v40 = vsub.s32 1, %v1938_v33 }
 0x160   :  { %v1543_v46 = vpop.eup %1542  ;;  %520 = vadd.xlane.f32.xlu0 %v519_v45  ;;  %v506_v49 = vmul.f32 %v1541_v44, %v1282_v12 }
 0x161   :  { %v505_v47 = vmul.f32 %v1543_v46, %v1282_v12  ;;  %1505 = vmatpush3.bf16.msra.mxu1 %v1504_v38  ;;  %v618_v46 = vsub.s32 2, %v1938_v33 }
 0x162   :  { %v528_v51 = vsel %vm174_vm2, %v506_v49, 0.0  ;;  %1444 = vmatprep.subr.bf16.mxu1 %v1679_v1  ;;  %v726_v49 = vld [vmem:[%s2137_s9] sm:$0xff] }
 0x163   :  { %523 = vadd.xlane.f32.xlu1 %v522_v48  ;;  %v525_v50 = vsel %vm174_vm2, %v505_v47, 0.0  ;;  %v632_v47 = vsub.s32 4, %v1938_v33  ;;  %v625_v48 = vsub.s32 3, %v1938_v33 }
 0x164   :  { %526 = vadd.xlane.f32.xlu0 %v525_v50  ;;  %1430 = vmatmul.mubr.msk.f32.vlgmr.msra.gmra.mrb[8].mxu1 %vm174_vm2, %v1872_v17  ;;  %v727_v50 = vld [vmem:[%s2137_s9 + $0x8] sm:$0xff] }
 0x165   :  { %1448 = vmatprep.mubr.msk.bf16.mxu1 %vm1678_vm0, %v1679_v1 }
 0x167   :  { %529 = vadd.xlane.f32.xlu1 %v528_v51 }
 0x1e5   :  { %v509_v53 = vpop.xlane.xlu0 %508 }
 0x1e6   :  { %v545_v58 = vrot.slane %v509_v53, %v544_v54  ;;  %v1483_v53 = vpack.c.bf16 %v727_v50, %v726_v49 }
 0x1e8   :  { %v518_v55 = vpop.xlane.xlu1 %517  ;;  %1484 = vmatpush3.bf16.msra.mxu0 %v1483_v53 }
 0x1e9   :  { %v512_v56 = vpop.xlane.xlu0 %511  ;;  %v557_v62 = vrot.slane %v518_v55, %v544_v54  ;;  %v729_v55 = vld [vmem:[%s2137_s9 + $0x18] sm:$0xff]  ;;  %1485 = vmatprep.subr.bf16.mxu0 %v1677_v0 }
 0x1ea   :  { %v549_v57 = vrot.slane %v512_v56, %v544_v54 }
 0x1ec   :  { %v515_v59 = vpop.xlane.xlu1 %514  ;;  %v575_v63 = vsel %vm574_vm3, %v549_v57, %v545_v58  ;;  %v639_v58 = vsub.s32 5, %v1938_v33 }
 0x1ed   :  { %v553_v60 = vrot.slane %v515_v59, %v544_v54  ;;  %v521_v61 = vpop.xlane.xlu0 %520 }
 0x1ee   :  { %v561_v2 = vrot.slane %v521_v61, %v544_v54  ;;  %v731_v61 = vld [vmem:[%s2137_s9 + $0x28] sm:$0xff] }
 0x1ef   :  { %v577_v31 = vsel %vm576_vm4, %v553_v60, %v575_v63  ;;  %v730_v60 = vld [vmem:[%s2137_s9 + $0x20] sm:$0xff]  ;;  %v653_v63 = vsub.s32 7, %v1938_v33 }
 0x1f0   :  { %v579_v3 = vsel %vm578_vm5, %v557_v62, %v577_v31  ;;  %v524_v4 = vpop.xlane.xlu1 %523  ;;  %v732_v31 = vld [vmem:[%s2137_s9 + $0x30] sm:$0xff] }
 0x1f1   :  { %v581_v5 = vsel %vm580_vm6, %v561_v2, %v579_v3  ;;  %v565_v6 = vrot.slane %v524_v4, %v544_v54  ;;  %v527_v7 = vpop.xlane.xlu0 %526  ;;  %v1489_v2 = vpack.c.bf16 %v731_v61, %v730_v60  ;;  %v733_v3 = vld [vmem:[%s2137_s9 + $0x38] sm:$0xff] }
 0x1f2   :  { %v569_v8 = vrot.slane %v527_v7, %v544_v54 }
 0x1f3   :  { %v583_v10 = vsel %vm582_vm7, %v565_v6, %v581_v5  ;;  %v1492_v5 = vpack.c.bf16 %v733_v3, %v732_v31 }
 0x1f4   :  { %v530_v11 = vpop.xlane.xlu1 %529  ;;  %v585_v13 = vsel %vm584_vm8, %v569_v8, %v583_v10 }
 0x1f5   :  { %v573_v12 = vrot.slane %v530_v11, %v544_v54  ;;  %v728_v54 = vld [vmem:[%s2137_s9 + $0x10] sm:$0xff] }
 0x1f6   :  { %v1486_v59 = vpack.c.bf16 %v729_v55, %v728_v54 }
 0x1f7   :  { %v587_v14 = vsel %vm586_vm9, %v573_v12, %v585_v13 }
 0x1f8   :  { %v589_v15 = vsel %vm531_vm10, %v587_v14, -1e+10  ;;  %1487 = vmatpush3.bf16.msra.mxu0 %v1486_v59 }
 0x1f9   :  { %v591_v18 = vsel %vm590_vm11, %v589_v15, -inf  ;;  %1488 = vmatprep.subr.bf16.mxu0 %v1677_v0 }
 0x1fa   :  { %592 = vmax.xlane.f32.xlu0 %v591_v18 }
 0x1fc   :  { %1490 = vmatpush3.bf16.msra.mxu0 %v1489_v2 }
 0x1fd   :  { %1491 = vmatprep.subr.bf16.mxu0 %v1677_v0 }
 0x200   :  { %1493 = vmatpush3.bf16.msra.mxu0 %v1492_v5 }
 0x201   :  { %1494 = vmatprep.subr.bf16.mxu0 %v1677_v0 }
 0x237   :  { %v979_v6 = vpop.f32.mrb[8].mxu1 }
 0x238   :  { %v1431_v8 = vpop.f32.mrb[9].mxu1 }
 0x287   :  { %v593_v19 = vpop.xlane.xlu0 %592 }
 0x288   :  { %v594_v20 = vsub.f32 %v589_v15, %v593_v19 }
 0x28a   :  { %v595_v21 = vmul.f32 1.442695, %v594_v20 }
 0x28c   :  { %1544 = vpow2.f32 %v595_v21 }
 0x296   :  { %v1545_v29 = vpop.eup %1544 }
 0x297   :  { %v597_v30 = vsel %vm590_vm11, %v1545_v29, 0.0 }
 0x298   :  { %598 = vadd.xlane.f32.xlu1 %v597_v30 }
 0x325   :  { %v599_v39 = vpop.xlane.xlu1 %598 }
 0x326   :  { %1546 = vrcp.f32 %v599_v39 }
 0x330   :  { %v1547_v42 = vpop.eup %1546 }
 0x331   :  { %v601_v43 = vmul.f32 %v1547_v42, %v1545_v29 }
 0x333   :  { %1020 = vst.msk [vmem:[%s2145_s17] sm:$0xff] %vm590_vm11, %v601_v43  ;;  %v612_v44 = vrot.slane %v601_v43, %v611_v40  ;;  %v605_v45 = vrot.slane %v601_v43, %v1945_v41  ;;  %v619_v51 = vrot.slane %v601_v43, %v618_v46  ;;  %v633_v52 = vrot.slane %v601_v43, %v632_v47 }
 0x334   :  { %v646_v41 = vsub.s32 6, %v1938_v33  ;;  %v626_v56 = vrot.slane %v601_v43, %v625_v48  ;;  %v640_v62 = vrot.slane %v601_v43, %v639_v58  ;;  %v654_v4 = vrot.slane %v601_v43, %v653_v63  ;;  %v1286_v33 = vld [vmem:[#allocation9] ss:$0 sm:$0xff] }
 0x335   :  { %614 = vbcast.lane.b32.xlu1 %v612_v44, 256  ;;  %607 = vbcast.lane.b32.xlu0 %v605_v45, 256  ;;  %v2023_v7 = vadd.f32 %v1286_v33, %v979_v6 }
 0x336   :  { %v647_v57 = vrot.slane %v601_v43, %v646_v41 }
 0x339   :  { %621 = vbcast.lane.b32.xlu1 %v619_v51, 256  ;;  %635 = vbcast.lane.b32.xlu0 %v633_v52, 256 }
 0x33d   :  { %628 = vbcast.lane.b32.xlu1 %v626_v56, 256  ;;  %649 = vbcast.lane.b32.xlu0 %v647_v57, 256 }
 0x341   :  { %642 = vbcast.lane.b32.xlu1 %v640_v62, 256  ;;  %991 = vrot.lane.b32.xlu0 %v2023_v7, %s1681_s30 }
 0x345   :  { %656 = vbcast.lane.b32.xlu1 %v654_v4, 256 }
 0x3a7   :  { %v615_v9 = vpop.permute.xlu1 %614  ;;  %v608_v10 = vpop.permute.xlu0 %607 }
 0x3a8   :  { %v659_v11 = vmul.f32 %v615_v9, %v1888_v22  ;;  %v658_v12 = vmul.f32 %v608_v10, %v1865_v16 }
 0x3aa   :  { %v673_v13 = vsel %vm256_vm1, %v659_v11, 0.0  ;;  %v666_v14 = vsel %vm256_vm1, %v658_v12, 0.0 }
 0x3ab   :  { %v674_v15 = vrot.slane %v673_v13, 4  ;;  %v667_v18 = vrot.slane %v666_v14, 4  ;;  %v622_v19 = vpop.permute.xlu1 %621  ;;  %v636_v20 = vpop.permute.xlu0 %635 }
 0x3ac   :  { %v660_v21 = vmul.f32 %v622_v19, %v1893_v23  ;;  %v662_v29 = vmul.f32 %v636_v20, %v1908_v25 }
 0x3ad   :  { %v675_v30 = vadd.f32 %v674_v15, %v673_v13  ;;  %v668_v32 = vadd.f32 %v667_v18, %v666_v14 }
 0x3ae   :  { %v680_v34 = vsel %vm256_vm1, %v660_v21, 0.0  ;;  %v694_v22 = vsel %vm256_vm1, %v662_v29, 0.0 }
 0x3af   :  { %v676_v35 = vrot.slane %v675_v30, 2  ;;  %v669_v16 = vrot.slane %v668_v32, 2  ;;  %v681_v36 = vrot.slane %v680_v34, 4  ;;  %v695_v37 = vrot.slane %v694_v22, 4  ;;  %v629_v38 = vpop.permute.xlu1 %628  ;;  %v650_v39 = vpop.permute.xlu0 %649 }
 0x3b0   :  { %v661_v40 = vmul.f32 %v629_v38, %v1903_v24  ;;  %v664_v42 = vmul.f32 %v650_v39, %v1922_v27  ;;  %v724_v39 = vld [vmem:[%s2136_s8 + $0x10] sm:$0xff] }
 0x3b1   :  { %v677_v43 = vadd.f32 %v676_v35, %v675_v30  ;;  %v682_v23 = vadd.f32 %v681_v36, %v680_v34  ;;  %v696_v44 = vadd.f32 %v695_v37, %v694_v22  ;;  %v670_v25 = vadd.f32 %v669_v16, %v668_v32  ;;  %v722_v32 = vld [vmem:[%s2136_s8] sm:$0xff]  ;;  %v723_v34 = vld [vmem:[%s2136_s8 + $0x8] sm:$0xff] }
 0x3b2   :  { %v687_v45 = vsel %vm256_vm1, %v661_v40, 0.0  ;;  %v708_v46 = vsel %vm256_vm1, %v664_v42, 0.0  ;;  %v1495_v37 = vpack.c.bf16 %v723_v34, %v722_v32  ;;  %v725_v40 = vld [vmem:[%s2136_s8 + $0x18] sm:$0xff] }
 0x3b3   :  { %v683_v47 = vrot.slane %v682_v23, 2  ;;  %v643_v48 = vpop.permute.xlu1 %642  ;;  %v697_v49 = vrot.slane %v696_v44, 2  ;;  %v688_v50 = vrot.slane %v687_v45, 4  ;;  %v709_v51 = vrot.slane %v708_v46, 4 }
 0x3b4   :  { %v663_v52 = vmul.f32 %v643_v48, %v1917_v26  ;;  %v678_v41 = vrot.slane %v677_v43, 1  ;;  %v671_v24 = vrot.slane %v670_v25, 1 }
 0x3b5   :  { %v684_v53 = vadd.f32 %v683_v47, %v682_v23  ;;  %v689_v54 = vadd.f32 %v688_v50, %v687_v45  ;;  %v710_v27 = vadd.f32 %v709_v51, %v708_v46  ;;  %v698_v59 = vadd.f32 %v697_v49, %v696_v44  ;;  %v2070_v23 = vld [vmem:[%s2150_s23] sm:$0xff]  ;;  %v1520_v44 = vld [vmem:[%s2141_s13 + $0x10] sm:$0xff]   ;;  %v1523_v45 = vld [vmem:[%s2141_s13 + $0x28] sm:$0xff]  }
 0x3b6   :  { %v701_v55 = vsel %vm256_vm1, %v663_v52, 0.0  ;;  %v679_v2 = vadd.f32 %v678_v41, %v677_v43  ;;  %v672_v31 = vadd.f32 %v671_v24, %v670_v25  ;;  %v1498_v43 = vpack.c.bf16 %v725_v40, %v724_v39  ;;  %v1522_v25 = vld [vmem:[%s2141_s13 + $0x20] sm:$0xff]  }
 0x3b7   :  { %v685_v56 = vrot.slane %v684_v53, 1  ;;  %v702_v57 = vrot.slane %v701_v55, 4  ;;  %v657_v58 = vpop.permute.xlu1 %656  ;;  %v690_v60 = vrot.slane %v689_v54, 2  ;;  %v711_v61 = vrot.slane %v710_v27, 2  ;;  %v1285_v51 = vld [vmem:[%s2138_s10] ss:$0 sm:$0xff] }
 0x3b8   :  { %v665_v62 = vmul.f32 %v657_v58, %v1931_v28  ;;  %v699_v6 = vrot.slane %v698_v59, 1  ;;  %v742_v12 = vsel %vm574_vm3, %v679_v2, %v672_v31  ;;  %s1682_s10 = smov 32   ;;  %v1524_v31 = vld [vmem:[%s2141_s13] sm:$0xff]  }
 0x3b9   :  { %v703_v63 = vadd.f32 %v702_v57, %v701_v55  ;;  %v691_v3 = vadd.f32 %v690_v60, %v689_v54  ;;  %v686_v4 = vadd.f32 %v685_v56, %v684_v53  ;;  %v712_v9 = vadd.f32 %v711_v61, %v710_v27  ;;  %v992_v60 = vpop.permute.xlu0 %991  ;;  %1445 = vmatpush3.bf16.msra.mxu1 %v1524_v31 }
 0x3ba   :  { %v715_v26 = vsel %vm256_vm1, %v665_v62, 0.0  ;;  %v700_v18 = vadd.f32 %v699_v6, %v698_v59  ;;  %1446 = vmatprep.subr.bf16.mxu1 %v1679_v1 }
 0x3bb   :  { %v704_v5 = vrot.slane %v703_v63, 2  ;;  %v716_v33 = vrot.slane %v715_v26, 4  ;;  %v692_v8 = vrot.slane %v691_v3, 1  ;;  %v743_v14 = vsel %vm576_vm4, %v686_v4, %v742_v12  ;;  %v1527_v12 = vld [vmem:[%s2141_s13 + $0x38] sm:$0xff]  }
 0x3bc   :  { %v713_v20 = vrot.slane %v712_v9, 1 }
 0x3bd   :  { %v705_v10 = vadd.f32 %v704_v5, %v703_v63  ;;  %v717_v11 = vadd.f32 %v716_v33, %v715_v26  ;;  %v693_v13 = vadd.f32 %v692_v8, %v691_v3  ;;  %v1525_v3 = vld [vmem:[%s2141_s13 + $0x8] sm:$0xff]  }
 0x3be   :  { %v714_v16 = vadd.f32 %v713_v20, %v712_v9  ;;  %1447 = vmatpush3.bf16.msra.mxu1 %v1525_v3 }
 0x3bf   :  { %v706_v28 = vrot.slane %v705_v10, 1  ;;  %v718_v15 = vrot.slane %v717_v11, 2  ;;  %v744_v19 = vsel %vm578_vm5, %v693_v13, %v743_v14  ;;  %1452 = vmatprep.subr.bf16.mxu1 %v1679_v1  ;;  %v1026_v13 = vpack.c.bf16 %v2070_v23, %v2070_v23 }
 0x3c0   :  { %v745_v30 = vsel %vm580_vm6, %v700_v18, %v744_v19 }
 0x3c1   :  { %v707_v21 = vadd.f32 %v706_v28, %v705_v10  ;;  %v719_v29 = vadd.f32 %v718_v15, %v717_v11  ;;  %v1526_v10 = vld [vmem:[%s2141_s13 + $0x30] sm:$0xff]  }
 0x3c3   :  { %v720_v22 = vrot.slane %v719_v29, 1  ;;  %v746_v35 = vsel %vm582_vm7, %v707_v21, %v745_v30  ;;  %v1300_v21 = vld [vmem:[#allocation11] ss:$0 sm:$0xff] }
 0x3c4   :  { %v747_v38 = vsel %vm584_vm8, %v714_v16, %v746_v35 }
 0x3c5   :  { %v721_v36 = vadd.f32 %v720_v22, %v719_v29 }
 0x3c7   :  { %v748_v42 = vsel %vm586_vm9, %v721_v36, %v747_v38 }
 0x3c8   :  { %1408 = vmatmul.mubr.msk.f32.vlgmr.msra.gmra.mrb[2].mxu0 %vm256_vm1, %v748_v42  ;;  %1018 = vst.msk [vmem:[#allocation3] sm:$0xff] %vm256_vm1, %v748_v42 }
 0x3c9   :  { %1496 = vmatpush3.bf16.msra.mxu0 %v1495_v37  ;;  %1418 = vmatprep.mubr.msk.f32.mxu0 %vm1678_vm0, %v1679_v1 }
 0x3ca   :  { %1497 = vmatprep.subr.bf16.mxu0 %v1677_v0  ;;  %v1521_v0 = vld [vmem:[%s2141_s13 + $0x18] sm:$0xff]  }
 0x3cd   :  { %1499 = vmatpush3.bf16.msra.mxu0 %v1498_v43 }
 0x3ce   :  { %1432 = vmatprep.subr.bf16.mxu0 %v1679_v1 }
 0x3cf   :  { %v1023_v46 = vld [vmem:[#allocation3] sm:$0xff] }
 0x3d0   :  { %1419 = vmatmul.mubr.msk.f32.vlgmr.msra.gmra.mrb[4].mxu0 %vm174_vm2, %v2070_v23  ;;  %v1024_v47 = vpack.c.bf16 %v1023_v46, %v1023_v46 }
 0x3d1   :  { %1433 = vmatpush3.bf16.msra.mxu0 %v1520_v44  ;;  %1440 = vmatprep.mubr.msk.bf16.mxu0 %vm1678_vm0, %v1679_v1 }
 0x3d2   :  { %1434 = vmatprep.subr.bf16.mxu0 %v1679_v1 }
 0x3d5   :  { %1435 = vmatpush3.bf16.msra.mxu0 %v1521_v0 }
 0x3d6   :  { %1436 = vmatprep.subr.bf16.mxu0 %v1679_v1 }
 0x3d9   :  { %1437 = vmatpush3.bf16.msra.mxu0 %v1522_v25 }
 0x3da   :  { %1438 = vmatprep.subr.bf16.mxu0 %v1679_v1 }
 0x3dd   :  { %1439 = vmatpush3.bf16.msra.mxu0 %v1523_v45 }
 0x3e0   :  { %1441 = vmatmul.mubr.msk.bf16.vlgmr.msra.gmra.mrb[8].mxu0 %vm256_vm1, %v1024_v47 }
 0x49b   :  { %v817_v48 = vpop.f32.mrb[2].mxu0 }
 0x49c   :  { %v1409_v49 = vpop.f32.mrb[3].mxu0 }
 0x4a3   :  { %v890_v50 = vpop.f32.mrb[4].mxu0 }
 0x4a4   :  { %v891_v52 = vadd.f32 %v890_v50, %v817_v48  ;;  %v1420_v41 = vpop.f32.mrb[5].mxu0 }
 0x4a6   :  { %v901_v53 = vadd.f32 %v1285_v51, %v891_v52 }
 0x4a8   :  { %v983_v24 = vadd.f32 %v2023_v7, %v901_v53 }
 0x4aa   :  { %v1288_v54 = vmul.f32 -1.442695, %v983_v24 }
 0x4ac   :  { %1548 = vpow2.f32 %v1288_v54 }
 0x4b3   :  { %v1101_v27 = vpop.f32.mrb[8].mxu0 }
 0x4b4   :  { %v1442_v55 = vpop.f32.mrb[9].mxu0 }
 0x4b5   :  { %v1104_v56 = vpop.f32.mrb[10].mxu0 }
 0x4b6   :  { %v1549_v57 = vpop.eup %1548  ;;  %v1443_v58 = vpop.f32.mrb[11].mxu0 }
 0x4b7   :  { %v987_v59 = vadd.f32 1.0, %v1549_v57 }
 0x4b9   :  { %1550 = vrcp.f32 %v987_v59 }
 0x4c3   :  { %v1551_v61 = vpop.eup %1550 }
 0x4c4   :  { %v994_v62 = vmul.f32 %v1551_v61, %v992_v60 }
 0x4c6   :  { %996 = vrot.lane.b32.xlu1 %v994_v62, %s1681_s30 }
 0x4ca   :  { %1007 = vrot.lane.b32.xlu1 %v1872_v17, %s1682_s10  ;;  %v1001_v17 = vsub.f32 1.0, %v1551_v61 }
 0x538   :  { %v997_v63 = vpop.permute.xlu1 %996 }
 0x539   :  { %v999_v2 = vadd.f32 %v997_v63, %v901_v53 }
 0x53b   :  { %1552 = vtanh.f32 %v999_v2 }
 0x53c   :  { %v1008_v26 = vpop.permute.xlu1 %1007 }
 0x53d   :  { %v1010_v5 = vmul.f32 %v1551_v61, %v1008_v26 }
 0x545   :  { %v1553_v7 = vpop.eup %1552 }
 0x546   :  { %1003 = vrot.lane.b32.xlu0 %v1553_v7, %s1683_s21 }
 0x5b8   :  { %v1004_v4 = vpop.permute.xlu0 %1003 }
 0x5b9   :  { %v1006_v33 = vmul.f32 %v1004_v4, %v1001_v17 }
 0x5bb   :  { %v1011_v6 = vadd.f32 %v1010_v5, %v1006_v33 }
 0x5bd   :  { %1013 = vrot.lane.b32.xlu0 %v1011_v6, %s1683_s21 }
 0x62f   :  { %v1014_v8 = vpop.permute.xlu0 %1013 }
 0x630   :  { %1016 = vst.msk [vmem:[#allocation2] sm:$0xff] %vm174_vm2, %v1014_v8  ;;  %1019 = vst.msk [vmem:[%s2144_s16] sm:$0xff] %vm174_vm2, %v1014_v8 }
 0x637   :  { %v1021_v9 = vld [vmem:[#allocation2] sm:$0xff] }
 0x638   :  { %v1022_v11 = vpack.c.bf16 %v1021_v9, %v1021_v9 }
 0x63a   :  { %1449 = vmatmul.mubr.msk.bf16.vlgmr.msra.gmra.mrb[12].mxu1 %vm174_vm2, %v1022_v11 }
 0x63b   :  { %1453 = vmatpush3.bf16.msra.mxu1 %v1526_v10  ;;  %1456 = vmatprep.mubr.msk.bf16.mxu1 %vm1678_vm0, %v1679_v1 }
 0x63c   :  { %1454 = vmatprep.subr.bf16.mxu1 %v1679_v1 }
 0x63f   :  { %1455 = vmatpush3.bf16.msra.mxu1 %v1527_v12 }
 0x642   :  { %1457 = vmatmul.mubr.msk.bf16.vlgmr.msra.gmra.mrb[16].mxu1 %vm174_vm2, %v1026_v13 }
 0x70d   :  { %v1157_v14 = vpop.f32.mrb[12].mxu1 }
 0x70e   :  { %v1158_v28 = vadd.f32 %v1157_v14, %v1101_v27  ;;  %v1450_v15 = vpop.f32.mrb[13].mxu1 }
 0x70f   :  { %v1160_v18 = vpop.f32.mrb[14].mxu1 }
 0x710   :  { %v1451_v19 = vpop.f32.mrb[15].mxu1 }
 0x715   :  { %v1216_v20 = vpop.f32.mrb[16].mxu1 }
 0x716   :  { %v1222_v29 = vadd.f32 %v1216_v20, %v1158_v28  ;;  %v1458_v30 = vpop.f32.mrb[17].mxu1 }
 0x717   :  { %v1219_v32 = vpop.f32.mrb[18].mxu1 }
 0x718   :  { %v1230_v34 = vadd.f32 %v1300_v21, %v1222_v29  ;;  %v1459_v22 = vpop.f32.mrb[19].mxu1 }
 0x71a   :  { %1231 = vst [vmem:[%s2151_s19] sm:$0xff] %v1230_v34 }
 0x71b   :  { %1255 = vsyncpa [#allocation5], 1 }
 0x71c   :  { %1256 = vsyncpa [#allocation7], 1 }
 0x71d   :  { %1257 = vsyncpa [#allocation10], 1 }

</bundles_post_ra>
